<compile_context>
chip_gen: v6e
topology: v6e:2x2x1
jax: 0.10.0
libtpu: 0.0.40
codegen_flags: <defaults>
</compile_context>

<pallas_src>
import functools

import jax
import jax.numpy as jnp
from jax.experimental import pallas as pl
from jax.experimental.pallas import tpu as pltpu


_LANE = 128
_VMEM_LIMIT_BYTES = 32 * 1024 * 1024    # safe on v5e/v6e (128 MiB phys) and v7x (64 MiB phys)
_VMEM_BUDGET_BYTES = 24 * 1024 * 1024   # target working-set for the kernel's buffers


def _round_up(n, m):
    return (n + m - 1) // m * m


def dense_with_tree_kernel(x_ref, w_ref, b_ref, o_ref):
    # x_ref: (bm, K)   batch tile of activations
    # w_ref: (K, bn)   pre-masked weight tile ((W*tree).T folded at prepare time), lane-padded
    # b_ref: (1, bn)   bias tile (f32)
    # o_ref: (bm, bn)  lane-dense output tile (f32)
    acc = jnp.dot(x_ref[...], w_ref[...], preferred_element_type=jnp.float32)
    o_ref[...] = (acc + b_ref[...]).astype(o_ref.dtype)


def prepare_params(W_t, tree_t, b_t, dtype=jnp.float32):
    """One-time re-layout + tree-mask fold (redo whenever W / tree change).

    torch layouts in : W (N, K), tree (N, K), b (N,)
    kernel layouts out: w_pad (K, Npad) = (W*tree).T lane-padded (dtype), b_pad (1, Npad) f32.
    """
    N, K = W_t.shape
    Np = _round_up(N, _LANE)
    # Mask fold in f32 (v5e has no bf16 VALU); only the matmul operand is cast to `dtype`.
    w_masked = W_t.astype(jnp.float32) * tree_t.astype(jnp.float32)
    w_pad = jnp.zeros((K, Np), jnp.float32).at[:, :N].set(jnp.transpose(w_masked)).astype(dtype)
    b_pad = jnp.zeros((1, Np), jnp.float32).at[0, :N].set(b_t.astype(jnp.float32))
    return w_pad, b_pad


@functools.lru_cache(maxsize=None)
def _single_buffer_supported():
    """Probe whether pl.BlockSpec(..., pipeline_mode=pl.Buffered(1)) compiles & runs here."""
    if not hasattr(pl, "Buffered"):
        return False
    try:
        def _probe(w_ref, x_ref, o_ref):
            o_ref[...] = x_ref[...] + w_ref[...]

        w = jnp.ones((8, 128), jnp.float32)
        x = jnp.ones((16, 128), jnp.float32)
        out = pl.pallas_call(
            _probe,
            out_shape=jax.ShapeDtypeStruct((16, 128), jnp.float32),
            grid=(2,),
            in_specs=[
                pl.BlockSpec((8, 128), lambda i: (0, 0), pipeline_mode=pl.Buffered(1)),
                pl.BlockSpec((8, 128), lambda i: (i, 0)),
            ],
            out_specs=pl.BlockSpec((8, 128), lambda i: (i, 0)),
        )(w, x)
        jax.block_until_ready(out)
        return bool(jnp.allclose(out, 2.0))
    except Exception:
        return False


def _invariant_spec(block_shape, index_map):
    """BlockSpec for operands whose block index is constant over the inner (batch) axis."""
    if _single_buffer_supported():
        return pl.BlockSpec(block_shape, index_map, pipeline_mode=pl.Buffered(1))
    return pl.BlockSpec(block_shape, index_map)


def _choose_bn(K, Np, bm, itemsize):
    """Largest multiple of 128 <= Np whose working set fits the VMEM budget."""
    w_bufs = 1 if _single_buffer_supported() else 2

    def fits(bn):
        need = (w_bufs * K * bn * itemsize      # weight tile(s)
                + 2 * bm * K * itemsize         # double-buffered x tile
                + 2 * bm * bn * 4               # double-buffered f32 output tile
                + 2 * bn * 4)                   # bias
        return need <= _VMEM_BUDGET_BYTES

    bn = Np
    while bn > _LANE and not fits(bn):
        bn = _round_up(bn // 2, _LANE)
    return bn


def dense_with_tree_forward(x, w_pad, b_pad, *, out_dim, block_b=512):
    """x: (B, K).  Returns (B, out_dim) f32 = x @ (W * tree).T + b."""
    B, K = x.shape
    Kw, Np = w_pad.shape
    assert Kw == K, "x feature dim must match prepared weight"

    x = x.astype(w_pad.dtype)                       # bf16 path: activations match weight dtype

    bm = min(block_b, _round_up(B, 8))              # >= 8 rows for sublane alignment
    bn = _choose_bn(K, Np, bm, w_pad.dtype.itemsize)

    # N outermost so the weight/bias tiles are loop-invariant over the (inner) batch axis;
    # ragged last blocks (B % bm, Np % bn) are masked by Pallas -- no padding copies.
    grid = (pl.cdiv(Np, bn), pl.cdiv(B, bm))

    flops = 2 * B * K * Np + B * Np
    bytes_accessed = (x.dtype.itemsize * B * K * grid[0]
                      + w_pad.dtype.itemsize * K * Np
                      + 4 * Np + 4 * B * Np)

    out = pl.pallas_call(
        dense_with_tree_kernel,
        out_shape=jax.ShapeDtypeStruct((B, Np), jnp.float32),
        grid_spec=pltpu.PrefetchScalarGridSpec(
            num_scalar_prefetch=0,
            grid=grid,
            in_specs=[
                pl.BlockSpec((bm, K), lambda j, i: (i, 0)),      # batch tile of x
                _invariant_spec((K, bn), lambda j, i: (0, j)),   # pre-masked weight tile
                _invariant_spec((1, bn), lambda j, i: (0, j)),   # bias tile
            ],
            out_specs=pl.BlockSpec((bm, bn), lambda j, i: (i, j)),
        ),
        compiler_params=pltpu.CompilerParams(
            dimension_semantics=("parallel", "parallel"),
            vmem_limit_bytes=_VMEM_LIMIT_BYTES,
        ),
        cost_estimate=pl.CostEstimate(
            flops=int(flops), transcendentals=0, bytes_accessed=int(bytes_accessed)),
    )(x, w_pad, b_pad)

    return out[:, :out_dim]


if __name__ == "__main__":
    # Small shapes implied by the module: x is (batch, input_dim); Linear(input_dim, output_dim).
    B = 2
    input_dim = 64
    output_dim = 32

    root = jax.random.PRNGKey(0)
    k_w, k_t, k_x = jax.random.split(root, 3)

    # torch layouts: weight (output_dim, input_dim), bias (output_dim,), tree_weight same shape.
    # kernel_initializer='kaiming_normal' (std = sqrt(2 / fan_in)), bias_initializer='zeros'.
    W_t = jax.random.normal(k_w, (output_dim, input_dim), jnp.float32) * jnp.sqrt(2.0 / input_dim)
    b_t = jnp.zeros((output_dim,), jnp.float32)
    # TODO(synk): the real tree_weight is a connectivity mask derived from the phylogenetic
    # tree (host-side preprocessing); replaced by a deterministic random 0/1 mask here.
    tree_t = (jax.random.uniform(k_t, (output_dim, input_dim)) < 0.3).astype(jnp.float32)

    x = jax.random.normal(k_x, (B, input_dim), jnp.float32)

    # Pure-JAX reference of the PyTorch forward.
    ref = x @ jnp.transpose(W_t * tree_t) + b_t

    # f32 path (exact): one-time mask fold + re-layout, then the Pallas forward.
    w_pad, b_pad = prepare_params(W_t, tree_t, b_t, dtype=jnp.float32)
    out = dense_with_tree_forward(x, w_pad, b_pad, out_dim=output_dim)
    jax.block_until_ready(out)
    assert out.shape == (B, output_dim)
    assert jnp.allclose(out, ref, atol=1e-5, rtol=1e-5)

    # bf16 operand path (f32 accumulation) for v6e/v7x MXU; the 0/1 mask fold stays exact.
    w16, b16 = prepare_params(W_t, tree_t, b_t, dtype=jnp.bfloat16)
    out16 = dense_with_tree_forward(x, w16, b16, out_dim=output_dim)
    jax.block_until_ready(out16)
    assert out16.shape == (B, output_dim)
    assert jnp.allclose(out16, ref, atol=5e-2, rtol=5e-2)

    print("KERNEL_OK")
</pallas_src>

<mosaic_0001>
module attributes {stable_mosaic.version = 11 : i64} {
  func.func @_probe(%arg0: i32, %arg1: memref<8x128xf32, #tpu.memory_space<vmem>>, %arg2: memref<8x128xf32, #tpu.memory_space<vmem>>, %arg3: memref<8x128xf32, #tpu.memory_space<vmem>>) attributes {dimension_semantics = [#tpu.dimension_semantics<arbitrary>], iteration_bounds = array<i64: 2>, scalar_prefetch = 0 : i64, scratch_operands = 0 : i64, tpu.core_type = #tpu.core_type<tc>, window_params = [{pipeline_mode = #tpu.pipeline_mode<synchronous>, transform_indices = @transform_0, window_bounds = array<i64: 8, 128>}, {transform_indices = @transform_1, window_bounds = array<i64: 8, 128>}, {transform_indices = @transform_2, window_bounds = array<i64: 8, 128>}]} {
    %c0 = arith.constant 0 : index
    %c0_0 = arith.constant 0 : index
    %0 = vector.load %arg2[%c0, %c0_0] : memref<8x128xf32, #tpu.memory_space<vmem>>, vector<8x128xf32>
    %c0_1 = arith.constant 0 : index
    %c0_2 = arith.constant 0 : index
    %1 = vector.load %arg1[%c0_1, %c0_2] : memref<8x128xf32, #tpu.memory_space<vmem>>, vector<8x128xf32>
    %2 = arith.addf %0, %1 : vector<8x128xf32>
    %c0_3 = arith.constant 0 : index
    %c0_4 = arith.constant 0 : index
    %3 = vector.load %arg3[%c0_3, %c0_4] : memref<8x128xf32, #tpu.memory_space<vmem>>, vector<8x128xf32>
    tpu.vector_store %arg3[%c0_3, %c0_4], %2 {strides = array<i32>} : memref<8x128xf32, #tpu.memory_space<vmem>>, vector<8x128xf32>,
    return
  }
  func.func @transform_0(%arg0: i32) -> (i32, i32) {
    %c0_i32 = arith.constant 0 : i32
    %c0_i32_0 = arith.constant 0 : i32
    %c0_i32_1 = arith.constant 0 : i32
    return %c0_i32, %c0_i32_0 : i32, i32
  }
  func.func @transform_1(%arg0: i32) -> (i32, i32) {
    %c0_i32 = arith.constant 0 : i32
    %c0_i32_0 = arith.constant 0 : i32
    return %arg0, %c0_i32 : i32, i32
  }
  func.func @transform_2(%arg0: i32) -> (i32, i32) {
    %c0_i32 = arith.constant 0 : i32
    %c0_i32_0 = arith.constant 0 : i32
    return %arg0, %c0_i32 : i32, i32
  }
}

module attributes {stable_mosaic.version = 11 : i64} {
  func.func @dense_with_tree_kernel(%arg0: i32, %arg1: i32, %arg2: memref<8x64xf32, #tpu.memory_space<vmem>>, %arg3: memref<64x128xf32, #tpu.memory_space<vmem>>, %arg4: memref<1x128xf32, #tpu.memory_space<vmem>>, %arg5: memref<8x128xf32, #tpu.memory_space<vmem>>) attributes {dimension_semantics = [#tpu.dimension_semantics<parallel>, #tpu.dimension_semantics<parallel>], iteration_bounds = array<i64: 1, 1>, scalar_prefetch = 0 : i64, scratch_operands = 0 : i64, tpu.core_type = #tpu.core_type<tc>, window_params = [{transform_indices = @transform_0, window_bounds = array<i64: 8, 64>}, {transform_indices = @transform_1, window_bounds = array<i64: 64, 128>}, {transform_indices = @transform_2, window_bounds = array<i64: 1, 128>}, {transform_indices = @transform_3, window_bounds = array<i64: 8, 128>}]} {
    %c0 = arith.constant 0 : index
    %c0_0 = arith.constant 0 : index
    %0 = vector.load %arg2[%c0, %c0_0] : memref<8x64xf32, #tpu.memory_space<vmem>>, vector<8x64xf32>
    %c0_1 = arith.constant 0 : index
    %c0_2 = arith.constant 0 : index
    %1 = vector.load %arg3[%c0_1, %c0_2] : memref<64x128xf32, #tpu.memory_space<vmem>>, vector<64x128xf32>
    %cst = arith.constant dense<0.000000e+00> : vector<8x128xf32>
    %2 = tpu.matmul %0, %1, %cst {dimension_numbers = #tpu.dot_dimension_numbers<[1], [0], [0], [1], [0, 0, 1, 1], [], []>} : vector<8x64xf32>, vector<64x128xf32>, vector<8x128xf32> -> vector<8x128xf32>
    %c0_3 = arith.constant 0 : index
    %c0_4 = arith.constant 0 : index
    %3 = vector.load %arg4[%c0_3, %c0_4] : memref<1x128xf32, #tpu.memory_space<vmem>>, vector<1x128xf32>
    %4 = vector.broadcast %3 : vector<1x128xf32> to vector<8x128xf32>
    %5 = arith.addf %2, %4 : vector<8x128xf32>
    %c0_5 = arith.constant 0 : index
    %c0_6 = arith.constant 0 : index
    %6 = vector.load %arg5[%c0_5, %c0_6] : memref<8x128xf32, #tpu.memory_space<vmem>>, vector<8x128xf32>
    tpu.vector_store %arg5[%c0_5, %c0_6], %5 {strides = array<i32>} : memref<8x128xf32, #tpu.memory_space<vmem>>, vector<8x128xf32>,
    return
  }
  func.func @transform_0(%arg0: i32, %arg1: i32) -> (i32, i32) {
    %c0_i32 = arith.constant 0 : i32
    %c0_i32_0 = arith.constant 0 : i32
    return %arg1, %c0_i32 : i32, i32
  }
  func.func @transform_1(%arg0: i32, %arg1: i32) -> (i32, i32) {
    %c0_i32 = arith.constant 0 : i32
    %c0_i32_0 = arith.constant 0 : i32
    return %c0_i32, %arg0 : i32, i32
  }
  func.func @transform_2(%arg0: i32, %arg1: i32) -> (i32, i32) {
    %c0_i32 = arith.constant 0 : i32
    %c0_i32_0 = arith.constant 0 : i32
    return %c0_i32, %arg0 : i32, i32
  }
  func.func @transform_3(%arg0: i32, %arg1: i32) -> (i32, i32) {
    %c0_i32 = arith.constant 0 : i32
    return %arg1, %arg0 : i32, i32
  }
}

</mosaic_0001>

<bundles_post_ra>
// kernel: tpu_custom_call.1
= control target key start
LH: loop header
LB: loop body
LE: loop exit
PB: predicated region body
PF: predicated region fallthrough
CT: control target
= control target key end

     0   :  { %7 = vsyncpa [#allocation3], 0  ;;  %s651_s0 = inlined_call_operand.hbm [shape: f32[8,128], index: 0, kind: input, shape index: {}]   ;;  %s652_s1 = inlined_call_operand.hbm [shape: f32[16,128], index: 1, kind: input, shape index: {}]   ;;  %s653_s2 = inlined_call_operand.hbm [shape: f32[16,128], index: 2, kind: output, shape index: {}]  }
   0x1   :  { %8 = vsyncpa [#allocation6], 0 }
   0x2   :  { %10 = vsyncpa [#allocation6 + $0x1], 0 }
   0x3   :  { %11 = vsyncpa [#allocation4], 0 }
   0x4   :  { %13 = vsyncpa [#allocation4 + $0x1], 0  ;;  %s485_s9 = smov 0   ;;  %s487_s10 = smov 0  }
   0x5   :  { %s489_s11 = smov 0   ;;  %s491_s12 = smov 0  }
   0x6 LB: > { %s506_s13 = sadd.s32 4294967295, %s465_s12   ;;  %s272_s14 = sadd.s32 4294967294, %s465_s12   ;;  %s465_s12 = sphi %s491_s12, %s676_s12   ;;  %s461_s11 = sphi %s489_s11, %s675_s11   ;;  %s457_s10 = sphi %s487_s10, %s674_s10   ;;  %s453_s9 = sphi %s485_s9, %s673_s9  }
   0x7   : > { %p60_p0 = scmp.ne.s32.totalorder %s457_s10, %s453_s9  ;;  %p654_p1 = scmp.eq.s32.totalorder %s506_s13, 0 }
   0x8   : > { %p90_p3 = scmp.eq.s32.totalorder %s272_s14, 1  ;;  %p273_p5 = scmp.ge.s32.totalorder %s465_s12, 1 }
   0x9   : > { %p515_p4 = por %p654_p1, %p60_p0  ;;  %p97_p7 = scmp.lt.s32.totalorder %s465_s12, 3 }
   0xa   : > { %p520_p6 = por %p90_p3, %p60_p0  ;;  %s467_s18 = smov [#allocation2]  }
   0xb   : > { %s658_s15 = scalar_select %p515_p4, 1, 0 }
   0xc   : > { %s659_s16 = scalar_select %p520_p6, 1, 0 }
   0xd   : > { %p525_p8 = pnand %p273_p5, %p97_p7  ;;  %s110_s19 = sshll.u32 %s467_s18, 4  ;;  %s111_s19 = int_to_ptr.vmem [resolvable:$true] %s110_s19 }
   0xe   : > { %s533_s20 = sadd.s32 1, %s465_s12   ;;  %s47_s24 = sadd.s32 1, %s461_s11 }
   0xf   : > { %s660_s17 = scalar_select %p525_p8, 1, 0 }
  0x10   : > { %p294_p10 = pneg %p525_p8  ;;  %s44_s22 = ssub.s32 %s465_s12, %s533_s20 }
  0x11   : > { %p543_p12 = scmp.eq.s32.totalorder %s44_s22, 0  ;;  %p54_p13 = scmp.ne.s32.totalorder %s461_s11, %s457_s10 }
  0x12   : > { %p537_p11 = pnand %p294_p10, %p654_p1  ;;  %s354_s25 = scalar_lea.vmem %s111_s19, 128 }
  0x13   : > { %p355_p3 = scmp.ne.s32.totalorder %s111_s19, %s354_s25  ;;  %p362_p9 = scmp.lt.s32.totalorder %s111_s19, %s111_s19 }
  0x14   : > { %p345_p0 = pneg %p537_p11  ;;  %p363_p2 = scmp.lt.s32.totalorder %s354_s25, %s354_s25 }
  0x16   : > { %p357_p5 = pnand %p355_p3, %p345_p0  ;;  %p364_p10 = por %p363_p2, %p362_p9 }
  0x18   : > { %p358_p7 = pneg %p357_p5 }
  0x1a   : > { %p365_p1 = pnand %p364_p10, %p358_p7 }
  0x1c   : > { %368 = shalt.err (!%p365_p1)
}
  0x1d   : > { %297 = dma.hbm_to_vmem [thread:$0]  (!%p537_p11), %s651_s0, 128, %s111_s19, [#allocation3]  }
  0x1e   : > { %s560_s28 = scalar_select %p543_p12, %s461_s11, %s47_s24  }
  0x1f   : > { %p55_p1 = scmp.eq.s32.totalorder %s465_s12, 0  ;;  %p663_p2 = scmp.eq.s32.totalorder %s506_s13, 1 }
  0x20   : > { %p307_p0 = scmp.lt.s32.totalorder %s465_s12, 2  ;;  %s121_s30 = sand.u32 1, %s461_s11  }
  0x21   : > { %p568_p9 = por %p663_p2, %p54_p13  ;;  %p56_p3 = por %p55_p1, %p54_p13 }
  0x22   : > { %s276_s3 = sshll.u32 %s121_s30, 3  ;;  %s277_s4 = sshll.u32 %s465_s12, 7 }
  0x23   : > { %s664_s29 = scalar_select %p568_p9, 1, 0 }
  0x24   : > { %s581_s7 = scalar_lea.hbm %s652_s1, %s277_s4  ;;  %s125_s8 = scalar_lea.vmem [#allocation5], %s276_s3 }
  0x25   : > { %s132_s14 = sshll.u32 %s125_s8, 4  ;;  %p583_p11 = pnand %p307_p0, %p56_p3  ;;  %s133_s14 = int_to_ptr.vmem [resolvable:$true] %s132_s14 }
  0x26   : > { %s122_s19 = scalar_lea.sflag [#allocation6], %s121_s30  ;;  %s369_s21 = scalar_lea.hbm %s581_s7, 128 }
  0x27   : > { %p370_p12 = scmp.ne.s32.totalorder %s581_s7, %s369_s21  ;;  %p371_p13 = pneg %p583_p11 }
  0x28   : > { %s374_s24 = scalar_lea.hbm %s652_s1, 256  ;;  %p375_p10 = scmp.lt.s32.totalorder %s581_s7, %s652_s1 }
  0x29   : > { %p372_p5 = pnand %p371_p13, %p370_p12  ;;  %p376_p1 = scmp.lt.s32.totalorder %s374_s24, %s369_s21 }
  0x2b   : > { %p373_p7 = pneg %p372_p5  ;;  %p377_p2 = por %p376_p1, %p375_p10 }
  0x2d   : > { %p378_p0 = pnand %p377_p2, %p373_p7 }
  0x2f   : > { %381 = shalt.err (!%p378_p0)
}
  0x30   : > { %s382_s27 = scalar_lea.vmem %s133_s14, 128  ;;  %s468_s30 = smov [#allocation5]  }
  0x31   : > { %p383_p3 = scmp.ne.s32.totalorder %s133_s14, %s382_s27  ;;  %s387_s3 = sshll.u32 %s468_s30, 4  ;;  %s388_s3 = int_to_ptr.vmem [resolvable:$false] %s387_s3 }
  0x32   : > { %s389_s4 = scalar_lea.vmem %s388_s3, 256  ;;  %p390_p12 = scmp.lt.s32.totalorder %s133_s14, %s388_s3 }
  0x33   : > { %p385_p6 = pnand %p383_p3, %p371_p13  ;;  %p391_p5 = scmp.lt.s32.totalorder %s389_s4, %s382_s27 }
  0x35   : > { %p386_p9 = pneg %p385_p6  ;;  %p392_p4 = por %p391_p5, %p390_p12 }
  0x37   : > { %p393_p8 = pnand %p392_p4, %p386_p9 }
  0x39   : > { %396 = shalt.err (!%p393_p8)
}
  0x3a   : > { %301 = dma.hbm_to_vmem [thread:$0]  (!%p583_p11), %s581_s7, 128, %s133_s14, %s122_s19  }
  0x3b   : > { %p666_p7 = scmp.ne.s32.totalorder %s660_s17, 0 }
  0x3c   : > { %p667_p10 = scmp.eq.s32.totalorder (!%p666_p7), %s506_s13, 0 }
  0x3d   : > { %141 = sbr.rel (%p666_p7) target bundleno = 96 (0x60), region = 28 }
  0x42   : > { %440 = dma.done.wait (%p667_p10), [#allocation3], 128   ;;  %p668_p6 = pmov %p667_p10 }
  0x43   : > { %s608_s5 = sand.u32 1, %s457_s10   ;;  %p669_p4 = scmp.ne.s32.totalorder %s658_s15, 0 }
  0x44   : > { %442 = vsyncadd (%p668_p6), [#allocation3], 4294967168  ;;  %s280_s6 = sshll.u32 %s608_s5, 3  ;;  %s148_s8 = scalar_lea.sflag [#allocation6], %s608_s5 }
  0x45   : > { %s151_s18 = scalar_lea.vmem [#allocation5], %s280_s6 }
  0x46   : > { %444 = dma.done.wait (%p669_p4), %s148_s8, 128  }
  0x47   : > { %446 = vsyncadd (%p669_p4), %s148_s8, 4294967168  ;;  %s171_s17 = scalar_lea.vmem [#allocation7], %s280_s6  ;;  %s283_s14 = sshll.u32 %s506_s13, 7  ;;  %v172_v0 = vld [vmem:[%s151_s18] sm:$0xff]  ;;  %v173_v1 = vld [vmem:[#allocation2] sm:$0xff] }
  0x48   : > { %s190_s7 = sshll.u32 %s171_s17, 4  ;;  %v174_v2 = vadd.f32 %v173_v1, %v172_v0  ;;  %s188_s22 = scalar_lea.hbm %s653_s2, %s283_s14  ;;  %s191_s7 = int_to_ptr.vmem [resolvable:$true] %s190_s7 }
  0x49   : > { %s177_s23 = scalar_lea.sflag [#allocation4], %s608_s5  ;;  %s397_s24 = scalar_lea.vmem %s191_s7, 128 }
  0x4a   : > { %175 = vst [vmem:[%s171_s17] sm:$0xff] %v174_v2  ;;  %p398_p8 = scmp.ne.s32.totalorder %s191_s7, %s397_s24  ;;  %p670_p9 = scmp.ne.s32.totalorder %s664_s29, 0 }
  0x4b   : > { %s469_s15 = smov [#allocation7]  }
  0x4c   : > { %p399_p11 = pnand %p398_p8, %p670_p9  ;;  %s401_s25 = sshll.u32 %s469_s15, 4  ;;  %s402_s25 = int_to_ptr.vmem [resolvable:$false] %s401_s25 }
  0x4d   : > { %s403_s26 = scalar_lea.vmem %s402_s25, 256  ;;  %p404_p1 = scmp.lt.s32.totalorder %s191_s7, %s402_s25 }
  0x4e   : > { %p400_p13 = pneg %p399_p11  ;;  %p405_p2 = scmp.lt.s32.totalorder %s403_s26, %s397_s24 }
  0x50   : > { %p406_p0 = por %p405_p2, %p404_p1 }
  0x52   : > { %p407_p3 = pnand %p406_p0, %p400_p13 }
  0x54   : > { %410 = shalt.err (!%p407_p3)
}
  0x55   : > { %s411_s13 = scalar_lea.hbm %s188_s22, 128  ;;  %s415_s3 = scalar_lea.hbm %s653_s2, 256 }
  0x56   : > { %p412_p12 = scmp.ne.s32.totalorder %s188_s22, %s411_s13  ;;  %p416_p10 = scmp.lt.s32.totalorder %s188_s22, %s653_s2 }
  0x57   : > { %p417_p6 = scmp.lt.s32.totalorder %s415_s3, %s411_s13 }
  0x58   : > { %p413_p5 = pnand %p412_p12, %p670_p9 }
  0x59   : > { %p418_p4 = por %p417_p6, %p416_p10 }
  0x5a   : > { %p414_p7 = pneg %p413_p5 }
  0x5c   : > { %p419_p8 = pnand %p418_p4, %p414_p7 }
  0x5e   : > { %422 = shalt.err (!%p419_p8)
}
  0x5f   : > { %292 = dma.vmem_to_hbm [thread:$0]  (%p670_p9), %s191_s7, 128, %s188_s22, %s177_s23  }
  0x60 PF: > { %s202_s6 = sand.u32 1, %s453_s9   ;;  %p671_p11 = scmp.ne.s32.totalorder %s659_s16, 0 }
  0x61   : > { %p672_p13 = scmp.ge.s32.totalorder %s465_s12, 2  ;;  %s203_s8 = scalar_lea.sflag [#allocation4], %s202_s6 }
  0x63   : > { %p303_p1 = pnand %p672_p13, %p671_p11 }
  0x65   : > { %p304_p2 = pneg %p303_p1 }
  0x67   : > { %448 = dma.done.wait (%p304_p2), %s203_s8, 128  }
  0x68   : > { %450 = vsyncadd (%p304_p2), %s203_s8, 4294967168  ;;  %p16_p0 = scmp.ge.s32.totalorder %s533_s20, 4   ;;  %s673_s9 = smov %s457_s10 }
  0x69   : > { %s674_s10 = smov %s461_s11  ;;  %s675_s11 = smov %s560_s28 }
  0x6a   : > { %s676_s12 = smov %s533_s20  ;;  %18 = sbr.rel (!%p16_p0) target bundleno = 6 (0x6), region = 78 }
  0x6f   :  { %208 = vsyncpa [#allocation3], 1 }
  0x70   :  { %210 = vsyncpa [#allocation3 + $0x1], 1 }
  0x71   :  { %211 = vsyncpa [#allocation6], 1 }
  0x72   :  { %213 = vsyncpa [#allocation6 + $0x1], 1 }
  0x73   :  { %214 = vsyncpa [#allocation4], 1 }
  0x74   :  { %216 = vsyncpa [#allocation4 + $0x1], 1 }

// kernel: tpu_custom_call.1
= control target key start
LH: loop header
LB: loop body
LE: loop exit
PB: predicated region body
PF: predicated region fallthrough
CT: control target
= control target key end

     0   :  { %8 = vsyncpa [#allocation3], 0  ;;  %s304_s0 = inlined_call_operand.hbm [shape: f32[2,64], index: 0, kind: input, shape index: {}]   ;;  %s305_s1 = inlined_call_operand.hbm [shape: f32[64,128], index: 1, kind: input, shape index: {}]   ;;  %s306_s2 = inlined_call_operand.vmem [shape: f32[1,128], index: 2, kind: input, shape index: {}]   ;;  %s307_s3 = inlined_call_operand.hbm [shape: f32[2,128], index: 3, kind: output, shape index: {}]  }
   0x1   :  { %9 = vsyncpa [#allocation6], 0 }
   0x2   :  { %10 = vsyncpa [#allocation4], 0 }
   0x3   :  { %15 = vsyncadd [#allocation3], 96  ;;  %s257_s12 = smov [#allocation2]  }
   0x4   :  { %s16_s13 = sshll.u32 %s257_s12, 4  ;;  %s17_s13 = int_to_ptr.vmem [resolvable:$true] %s16_s13 }
   0x5   :  { %s199_s14 = scalar_lea.vmem %s17_s13, 32  ;;  %s203_s15 = scalar_lea.vmem %s17_s13, 128 }
   0x6   :  { %p200_p0 = scmp.ne.s32.totalorder %s17_s13, %s199_s14  ;;  %p204_p1 = scmp.lt.s32.totalorder %s17_s13, %s17_s13 }
   0x7   :  { %p205_p2 = scmp.lt.s32.totalorder %s203_s15, %s199_s14 }
   0x9   :  { %p206_p3 = por %p205_p2, %p204_p1 }
   0xb   :  { %p207_p4 = pnand %p206_p3, %p200_p0 }
   0xd   :  { %210 = shalt.err (!%p207_p4)
}
   0xe   :  { %s258_s16 = smov 32   ;;  %s259_s17 = smov 2  }
   0xf   :  { %22 = dma.hbm_to_vmem [thread:$0]  %s304_s0, 32, %s17_s13, [#allocation3], %s258_s16, %s258_s16, %s259_s17  }
  0x10   :  { %s260_s20 = smov [#allocation5]  }
  0x11   :  { %s28_s21 = sshll.u32 %s260_s20, 4  ;;  %s29_s21 = int_to_ptr.vmem [resolvable:$true] %s28_s21 }
  0x12   :  { %s219_s22 = scalar_lea.vmem %s29_s21, 1024  ;;  %p224_p6 = scmp.lt.s32.totalorder %s29_s21, %s29_s21 }
  0x13   :  { %p220_p5 = scmp.ne.s32.totalorder %s29_s21, %s219_s22  ;;  %p225_p7 = scmp.lt.s32.totalorder %s219_s22, %s219_s22 }
  0x15   :  { %p226_p8 = por %p225_p7, %p224_p6 }
  0x17   :  { %p227_p9 = pnand %p226_p8, %p220_p5 }
  0x19   :  { %230 = shalt.err (!%p227_p9)
}
  0x1a   :  { %s261_s23 = smov 128   ;;  %s262_s24 = smov 8  }
  0x1b   :  { %34 = dma.hbm_to_vmem [thread:$0]  %s305_s1, 1024, %s29_s21, [#allocation6], %s261_s23, %s261_s23, %s262_s24  }
  0x1c   :  { %251 = dma.done.wait [#allocation3], 128  }
  0x1d   :  { %252 = vsyncadd [#allocation3], 4294967168 }
  0x1e   :  { %253 = dma.done.wait [#allocation6], 1024  }
  0x1f   :  { %254 = vsyncadd [#allocation6], 4294966272  ;;  %v263_v0 = vmov 0.0   ;;  %vm264_vm0 = vmmov 0   ;;  %v51_v1 = vld [vmem:[#allocation5 + $0x38] sm:$0xff]  ;;  %v50_v2 = vld [vmem:[#allocation5 + $0x30] sm:$0xff] }
  0x20   :  { %163 = vmatprep.subr.mxu0 %v263_v0  ;;  %179 = vmatprep.mubr.msk.f32.mxu0 %vm264_vm0, %v263_v0  ;;  %v49_v3 = vld [vmem:[#allocation5 + $0x28] sm:$0xff]  ;;  %v48_v4 = vld [vmem:[#allocation5 + $0x20] sm:$0xff]  ;;  %v47_v5 = vld [vmem:[#allocation5 + $0x18] sm:$0xff]  ;;  %vm59_vm1 = vcmask 523264  }
  0x21   :  { %164 = vmatpush3.msra.mxu0 %v51_v1  ;;  %v46_v6 = vld [vmem:[#allocation5 + $0x10] sm:$0xff]  ;;  %v45_v7 = vld [vmem:[#allocation5 + $0x8] sm:$0xff]  ;;  %v44_v8 = vld [vmem:[#allocation5] sm:$0xff] }
  0x22   :  { %165 = vmatprep.subr.mxu0 %v263_v0  ;;  %v43_v9 = vld [vmem:[#allocation2] sm:$0xff] }
  0x23   :  { %166 = vmatpush3.msra.mxu0 %v50_v2  ;;  %v152_v10 = vld [vmem:[%s306_s2] ss:$0 sm:$0xff] }
  0x24   :  { %167 = vmatprep.subr.mxu0 %v263_v0 }
  0x25   :  { %168 = vmatpush3.msra.mxu0 %v49_v3 }
  0x26   :  { %169 = vmatprep.subr.mxu0 %v263_v0 }
  0x27   :  { %170 = vmatpush3.msra.mxu0 %v48_v4 }
  0x28   :  { %171 = vmatprep.subr.mxu0 %v263_v0 }
  0x29   :  { %172 = vmatpush3.msra.mxu0 %v47_v5 }
  0x2a   :  { %173 = vmatprep.subr.mxu0 %v263_v0 }
  0x2b   :  { %174 = vmatpush3.msra.mxu0 %v46_v6 }
  0x2c   :  { %175 = vmatprep.subr.mxu0 %v263_v0 }
  0x2d   :  { %176 = vmatpush3.msra.mxu0 %v45_v7 }
  0x2e   :  { %177 = vmatprep.subr.mxu0 %v263_v0 }
  0x2f   :  { %178 = vmatpush3.msra.mxu0 %v44_v8 }
  0x30   :  { %180 = vmatmul.mubr.msk.f32.vlgmr.msra.gmra.mxu0 %vm59_vm1, %v43_v9 }
  0xf0   :  { %v129_v11 = vpop.f32.mrf.mxu0 }
  0xf1   :  { %v130_v12 = vadd.f32 %v152_v10, %v129_v11 }
  0xf2   :  { %v181_v13 = vpop.f32.mrf.mxu0 }
  0xf3   :  { %133 = vst [vmem:[#allocation7] sm:$0xff] %v130_v12 }
  0xf4   :  { %138 = vsyncadd [#allocation4], 96  ;;  %s265_s27 = smov [#allocation7]  }
  0xf5   :  { %s139_s28 = sshll.u32 %s265_s27, 4  ;;  %s140_s28 = int_to_ptr.vmem [resolvable:$true] %s139_s28 }
  0xf6   :  { %s231_s29 = scalar_lea.vmem %s140_s28, 32  ;;  %s235_s30 = scalar_lea.vmem %s140_s28, 128 }
  0xf7   :  { %p232_p10 = scmp.ne.s32.totalorder %s140_s28, %s231_s29  ;;  %p236_p11 = scmp.lt.s32.totalorder %s140_s28, %s140_s28 }
  0xf8   :  { %p237_p12 = scmp.lt.s32.totalorder %s235_s30, %s231_s29 }
  0xfa   :  { %p238_p13 = por %p237_p12, %p236_p11 }
  0xfc   :  { %p239_p0 = pnand %p238_p13, %p232_p10 }
  0xfe   :  { %242 = shalt.err (!%p239_p0)
}
  0xff   :  { %145 = dma.vmem_to_hbm [thread:$0]  %s140_s28, 32, %s307_s3, [#allocation4], %s258_s16, %s258_s16, %s259_s17  }
 0x100   :  { %255 = dma.done.wait [#allocation4], 128  }
 0x101   :  { %256 = vsyncadd [#allocation4], 4294967168 }
 0x102   :  { %149 = vsyncpa [#allocation3], 1 }
 0x103   :  { %150 = vsyncpa [#allocation6], 1 }
 0x104   :  { %151 = vsyncpa [#allocation4], 1 }

</bundles_post_ra>
